<compile_context>
chip_gen: v7x
topology: tpu7x:2x2x1
jax: 0.10.0
libtpu: 0.0.40
codegen_flags: <defaults>
</compile_context>

<pallas_src>
import functools

import jax
import jax.numpy as jnp
from jax.experimental import pallas as pl
from jax.experimental.pallas import tpu as pltpu

# Fits v7x's 64 MiB physical VMEM, above the 32 MiB scoped default on v6e/v7x.
_VMEM_LIMIT_BYTES = 48 * 1024 * 1024


def _pick_time_tile(t_out, max_tile=2048):
    """Largest lane-friendly tile that divides T_out (falls back to T_out)."""
    if t_out <= max_tile:
        return t_out
    for cand in (2048, 1024, 512, 256, 128):
        if cand <= max_tile and t_out % cand == 0:
            return cand
    return t_out


# ---------------- pass 1: dilated conv1 + BN1 partial stats ------------------
def _stage1_kernel(x_ref, w1_ref, b1_ref, a_ref, st_ref, *,
                   taps, dilation, t_out):
    # K shifted windows sliced directly from the ref (static offsets), folded
    # into a single matmul RHS of shape (K*Cin, T_out).
    windows = [
        x_ref[0, :, k * dilation:k * dilation + t_out].astype(jnp.float32)
        for k in range(taps)
    ]
    x_cat = jnp.concatenate(windows, axis=0)                  # (K*Cin, T_out)
    a = jax.lax.dot_general(w1_ref[...], x_cat,
                            (((1,), (0,)), ((), ())),
                            preferred_element_type=jnp.float32)
    a = a + b1_ref[...]                                       # (Cout, 1) bcast
    a_ref[0] = a
    # One-pass BN1 partial stats: per-channel sum and sum of squares.
    s = jnp.sum(a, axis=1, keepdims=True)                     # (C, 1)
    ss = jnp.sum(a * a, axis=1, keepdims=True)                # (C, 1)
    st_ref[0] = jnp.concatenate([s, ss], axis=1)              # (C, 2)


def _bn1_relu_conv2(a, sc1, sh1, w2, b2):
    """Shared by passes 2 and 3: BN1 (folded scale/shift) + ReLU + 1x1 conv."""
    h = jnp.maximum(a * sc1 + sh1, 0.0)                       # (C, Tt)
    y = jax.lax.dot_general(w2, h, (((1,), (0,)), ((), ())),
                            preferred_element_type=jnp.float32)
    return y + b2


# ---------------- pass 2: BN2 partial stats only (no y writeback) ------------
def _stage2_kernel(a_ref, sc1_ref, sh1_ref, w2_ref, b2_ref, st_ref):
    y = _bn1_relu_conv2(a_ref[0], sc1_ref[...], sh1_ref[...],
                        w2_ref[...], b2_ref[...])
    s = jnp.sum(y, axis=1, keepdims=True)
    ss = jnp.sum(y * y, axis=1, keepdims=True)
    st_ref[0, 0] = jnp.concatenate([s, ss], axis=1)           # (C, 2)


# ------- pass 3: recompute conv2, BN2 + residual (sliced from x) + ReLU ------
def _stage3_kernel(a_ref, x_ref, sc1_ref, sh1_ref, w2_ref, b2_ref,
                   sc2_ref, sh2_ref, o_ref, *, hrf, t_out):
    y = _bn1_relu_conv2(a_ref[0], sc1_ref[...], sh1_ref[...],
                        w2_ref[...], b2_ref[...])
    # Residual crop taken straight from the x row already in VMEM.
    r = x_ref[0, :, hrf:hrf + t_out].astype(jnp.float32)
    o = jnp.maximum(y * sc2_ref[...] + sh2_ref[...] + r, 0.0)
    o_ref[0] = o.astype(o_ref.dtype)


def residual_block(x, params, *, kernel_size, dilation, eps=1e-5):
    """x: (N, C, T) in PyTorch NCT layout. Returns (N, C, T_out)."""
    n, c, t = x.shape
    k, d = kernel_size, dilation
    assert (d * (k - 1)) % 2 == 0, (
        "residual crop needs dilation*(kernel_size-1) even "
        "(same constraint as the PyTorch module)")
    t_out = t - d * (k - 1)
    hrf = d * (k - 1) // 2
    w1, b1, g1, bt1, w2, b2, g2, bt2 = params

    # One-time weight repack: torch conv1 weight (Cout, Cin, K) -> (Cout, K*Cin)
    # matching the k-major stacking of the shifted input windows.
    w1f = jnp.transpose(w1, (0, 2, 1)).reshape(c, k * c).astype(jnp.float32)
    w2m = w2.reshape(c, c).astype(jnp.float32)
    b1c = b1.reshape(c, 1).astype(jnp.float32)
    b2c = b2.reshape(c, 1).astype(jnp.float32)

    t_tile = _pick_time_tile(t_out)
    n_t = t_out // t_tile
    cp1 = pltpu.CompilerParams(dimension_semantics=("parallel",),
                               vmem_limit_bytes=_VMEM_LIMIT_BYTES)
    cp2 = pltpu.CompilerParams(dimension_semantics=("parallel", "parallel"),
                               vmem_limit_bytes=_VMEM_LIMIT_BYTES)

    # ---- pass 1: conv1(+bias) -> a, BN1 partial stats ----
    a, st1 = pl.pallas_call(
        functools.partial(_stage1_kernel, taps=k, dilation=d, t_out=t_out),
        grid=(n,),
        in_specs=[
            pl.BlockSpec((1, c, t), lambda i: (i, 0, 0)),
            pl.BlockSpec((c, k * c), lambda i: (0, 0)),
            pl.BlockSpec((c, 1), lambda i: (0, 0)),
        ],
        out_specs=[
            pl.BlockSpec((1, c, t_out), lambda i: (i, 0, 0)),
            pl.BlockSpec((1, c, 2), lambda i: (i, 0, 0)),
        ],
        out_shape=[
            jax.ShapeDtypeStruct((n, c, t_out), jnp.float32),
            jax.ShapeDtypeStruct((n, c, 2), jnp.float32),
        ],
        compiler_params=cp1,
    )(x, w1f, b1c)

    # Reduce BN1 partials (tiny per-channel vectors; plain-JAX glue).
    cnt = float(n * t_out)
    mean1 = jnp.sum(st1[:, :, 0], axis=0) / cnt
    var1 = jnp.maximum(jnp.sum(st1[:, :, 1], axis=0) / cnt - mean1 * mean1, 0.0)
    inv1 = g1 * jax.lax.rsqrt(var1 + eps)
    sc1 = inv1.reshape(c, 1)
    sh1 = (bt1 - mean1 * inv1).reshape(c, 1)

    # ---- pass 2: BN1+ReLU + 1x1 conv2 -> BN2 partial stats (stats only) ----
    st2 = pl.pallas_call(
        _stage2_kernel,
        grid=(n, n_t),
        in_specs=[
            pl.BlockSpec((1, c, t_tile), lambda i, j: (i, 0, j)),
            pl.BlockSpec((c, 1), lambda i, j: (0, 0)),
            pl.BlockSpec((c, 1), lambda i, j: (0, 0)),
            pl.BlockSpec((c, c), lambda i, j: (0, 0)),
            pl.BlockSpec((c, 1), lambda i, j: (0, 0)),
        ],
        out_specs=pl.BlockSpec((1, 1, c, 2), lambda i, j: (i, j, 0, 0)),
        out_shape=jax.ShapeDtypeStruct((n, n_t, c, 2), jnp.float32),
        compiler_params=cp2,
    )(a, sc1, sh1, w2m, b2c)

    mean2 = jnp.sum(st2[:, :, :, 0], axis=(0, 1)) / cnt
    var2 = jnp.maximum(jnp.sum(st2[:, :, :, 1], axis=(0, 1)) / cnt
                       - mean2 * mean2, 0.0)
    inv2 = g2 * jax.lax.rsqrt(var2 + eps)
    sc2 = inv2.reshape(c, 1)
    sh2 = (bt2 - mean2 * inv2).reshape(c, 1)

    # ---- pass 3: recompute conv2, BN2 + residual crop + ReLU -> out ----
    out = pl.pallas_call(
        functools.partial(_stage3_kernel, hrf=hrf, t_out=t_out),
        grid=(n,),
        in_specs=[
            pl.BlockSpec((1, c, t_out), lambda i: (i, 0, 0)),
            pl.BlockSpec((1, c, t), lambda i: (i, 0, 0)),
            pl.BlockSpec((c, 1), lambda i: (0, 0)),
            pl.BlockSpec((c, 1), lambda i: (0, 0)),
            pl.BlockSpec((c, c), lambda i: (0, 0)),
            pl.BlockSpec((c, 1), lambda i: (0, 0)),
            pl.BlockSpec((c, 1), lambda i: (0, 0)),
            pl.BlockSpec((c, 1), lambda i: (0, 0)),
        ],
        out_specs=pl.BlockSpec((1, c, t_out), lambda i: (i, 0, 0)),
        out_shape=jax.ShapeDtypeStruct((n, c, t_out), x.dtype),
        compiler_params=cp1,
    )(a, x, sc1, sh1, w2m, b2c, sc2, sh2)
    return out


def _reference(x, params, *, kernel_size, dilation, eps=1e-5):
    """Pure-JAX reference mirroring the PyTorch forward (training-mode BN)."""
    w1, b1, g1, bt1, w2, b2, g2, bt2 = params
    n, c, t = x.shape
    d, k = dilation, kernel_size
    t_out = t - d * (k - 1)
    xf = x.astype(jnp.float32)
    a = jnp.zeros((n, c, t_out), jnp.float32)
    for kk in range(k):
        a = a + jnp.einsum('oi,nit->not', w1[:, :, kk],
                           xf[:, :, kk * d:kk * d + t_out])
    a = a + b1[None, :, None]
    m = a.mean((0, 2), keepdims=True)
    v = ((a - m) ** 2).mean((0, 2), keepdims=True)
    h = jnp.maximum((a - m) / jnp.sqrt(v + eps) * g1[None, :, None]
                    + bt1[None, :, None], 0.0)
    y = jnp.einsum('oi,nit->not', w2, h) + b2[None, :, None]
    m2 = y.mean((0, 2), keepdims=True)
    v2 = ((y - m2) ** 2).mean((0, 2), keepdims=True)
    y = (y - m2) / jnp.sqrt(v2 + eps) * g2[None, :, None] + bt2[None, :, None]
    hrf = d * (k - 1) // 2
    return jnp.maximum(y + xf[:, :, hrf:t - hrf], 0.0)


def make_params(key, res_channels, kernel_size):
    """Deterministic synthetic parameters (same shapes as the nn.Module)."""
    c, k = res_channels, kernel_size
    keys = jax.random.split(key, 8)
    w1 = jax.random.normal(keys[0], (c, c, k), jnp.float32) * 0.2   # torch (Cout, Cin, K)
    b1 = jax.random.normal(keys[1], (c,), jnp.float32) * 0.1
    w2 = jax.random.normal(keys[2], (c, c), jnp.float32) * 0.2      # torch (Cout, Cin, 1) squeezed
    b2 = jax.random.normal(keys[3], (c,), jnp.float32) * 0.1
    g1 = 1.0 + 0.1 * jax.random.normal(keys[4], (c,), jnp.float32)
    bt1 = 0.1 * jax.random.normal(keys[5], (c,), jnp.float32)
    g2 = 1.0 + 0.1 * jax.random.normal(keys[6], (c,), jnp.float32)
    bt2 = 0.1 * jax.random.normal(keys[7], (c,), jnp.float32)
    return (w1, b1, g1, bt1, w2, b2, g2, bt2)


if __name__ == "__main__":
    N, C, T = 2, 8, 32          # (batch, res_channels, sequence length), NCT
    KERNEL_SIZE, DILATION = 3, 2

    key = jax.random.PRNGKey(0)
    kx, kp = jax.random.split(key)
    x = jax.random.normal(kx, (N, C, T), jnp.float32)
    params = make_params(kp, C, KERNEL_SIZE)

    fwd = jax.jit(functools.partial(residual_block,
                                    kernel_size=KERNEL_SIZE, dilation=DILATION))
    out = jax.block_until_ready(fwd(x, params))

    ref = _reference(x, params, kernel_size=KERNEL_SIZE, dilation=DILATION)
    t_out = T - DILATION * (KERNEL_SIZE - 1)
    assert out.shape == (N, C, t_out), out.shape
    assert jnp.allclose(out, ref, atol=1e-4, rtol=1e-4), float(
        jnp.max(jnp.abs(out - ref)))

    print("KERNEL_OK")
</pallas_src>

<mosaic_0001>
module attributes {stable_mosaic.version = 11 : i64} {
  func.func @_stage1_kernel(%arg0: i32, %arg1: memref<1x8x32xf32, #tpu.memory_space<vmem>>, %arg2: memref<8x24xf32, #tpu.memory_space<vmem>>, %arg3: memref<8x1xf32, #tpu.memory_space<vmem>>, %arg4: memref<1x8x28xf32, #tpu.memory_space<vmem>>, %arg5: memref<1x8x2xf32, #tpu.memory_space<vmem>>) attributes {dimension_semantics = [#tpu.dimension_semantics<parallel>], iteration_bounds = array<i64: 2>, scalar_prefetch = 0 : i64, scratch_operands = 0 : i64, tpu.core_type = #tpu.core_type<tc>, window_params = [{transform_indices = @transform_0, window_bounds = array<i64: 1, 8, 32>}, {pipeline_mode = #tpu.pipeline_mode<synchronous>, transform_indices = @transform_1, window_bounds = array<i64: 8, 24>}, {pipeline_mode = #tpu.pipeline_mode<synchronous>, transform_indices = @transform_2, window_bounds = array<i64: 8, 1>}, {transform_indices = @transform_3, window_bounds = array<i64: 1, 8, 28>}, {transform_indices = @transform_4, window_bounds = array<i64: 1, 8, 2>}]} {
    %c0 = arith.constant 0 : index
    %c0_0 = arith.constant 0 : index
    %c0_1 = arith.constant 0 : index
    %0 = vector.load %arg1[%c0, %c0_0, %c0_1] : memref<1x8x32xf32, #tpu.memory_space<vmem>>, vector<1x8x28xf32>
    %1 = vector.shape_cast %0 : vector<1x8x28xf32> to vector<8x28xf32>
    %c0_2 = arith.constant 0 : index
    %c0_3 = arith.constant 0 : index
    %c2 = arith.constant 2 : index
    %2 = vector.load %arg1[%c0_2, %c0_3, %c2] : memref<1x8x32xf32, #tpu.memory_space<vmem>>, vector<1x8x28xf32>
    %3 = vector.shape_cast %2 : vector<1x8x28xf32> to vector<8x28xf32>
    %c0_4 = arith.constant 0 : index
    %c0_5 = arith.constant 0 : index
    %c4 = arith.constant 4 : index
    %4 = vector.load %arg1[%c0_4, %c0_5, %c4] : memref<1x8x32xf32, #tpu.memory_space<vmem>>, vector<1x8x28xf32>
    %5 = vector.shape_cast %4 : vector<1x8x28xf32> to vector<8x28xf32>
    %6 = tpu.concatenate %1, %3, %5 in 0 : vector<8x28xf32>, vector<8x28xf32>, vector<8x28xf32> -> vector<24x28xf32>
    %c0_6 = arith.constant 0 : index
    %c0_7 = arith.constant 0 : index
    %7 = vector.load %arg2[%c0_6, %c0_7] : memref<8x24xf32, #tpu.memory_space<vmem>>, vector<8x24xf32>
    %cst = arith.constant dense<0.000000e+00> : vector<8x28xf32>
    %8 = tpu.matmul %7, %6, %cst {dimension_numbers = #tpu.dot_dimension_numbers<[1], [0], [0], [1], [0, 0, 1, 1], [], []>} : vector<8x24xf32>, vector<24x28xf32>, vector<8x28xf32> -> vector<8x28xf32>
    %c0_8 = arith.constant 0 : index
    %c0_9 = arith.constant 0 : index
    %9 = vector.load %arg3[%c0_8, %c0_9] : memref<8x1xf32, #tpu.memory_space<vmem>>, vector<8x1xf32>
    %10 = vector.broadcast %9 : vector<8x1xf32> to vector<8x28xf32>
    %11 = arith.addf %8, %10 : vector<8x28xf32>
    %c0_10 = arith.constant 0 : index
    %c0_11 = arith.constant 0 : index
    %c0_12 = arith.constant 0 : index
    %12 = vector.load %arg4[%c0_10, %c0_11, %c0_12] : memref<1x8x28xf32, #tpu.memory_space<vmem>>, vector<1x8x28xf32>
    %13 = vector.shape_cast %12 : vector<1x8x28xf32> to vector<8x28xf32>
    %14 = vector.shape_cast %11 : vector<8x28xf32> to vector<1x8x28xf32>
    tpu.vector_store %arg4[%c0_10, %c0_11, %c0_12], %14 {strides = array<i32>} : memref<1x8x28xf32, #tpu.memory_space<vmem>>, vector<1x8x28xf32>,
    %cst_13 = arith.constant dense<0.000000e+00> : vector<8xf32>
    %15 = vector.multi_reduction <add>, %11, %cst_13 [1] : vector<8x28xf32> to vector<8xf32>
    %16 = vector.shape_cast %15 : vector<8xf32> to vector<8x1xf32>
    %17 = arith.mulf %11, %11 : vector<8x28xf32>
    %cst_14 = arith.constant dense<0.000000e+00> : vector<8xf32>
    %18 = vector.multi_reduction <add>, %17, %cst_14 [1] : vector<8x28xf32> to vector<8xf32>
    %19 = vector.shape_cast %18 : vector<8xf32> to vector<8x1xf32>
    %20 = tpu.concatenate %16, %19 in 1 : vector<8x1xf32>, vector<8x1xf32> -> vector<8x2xf32>
    %c0_15 = arith.constant 0 : index
    %c0_16 = arith.constant 0 : index
    %c0_17 = arith.constant 0 : index
    %21 = vector.load %arg5[%c0_15, %c0_16, %c0_17] : memref<1x8x2xf32, #tpu.memory_space<vmem>>, vector<1x8x2xf32>
    %22 = vector.shape_cast %21 : vector<1x8x2xf32> to vector<8x2xf32>
    %23 = vector.shape_cast %20 : vector<8x2xf32> to vector<1x8x2xf32>
    tpu.vector_store %arg5[%c0_15, %c0_16, %c0_17], %23 {strides = array<i32>} : memref<1x8x2xf32, #tpu.memory_space<vmem>>, vector<1x8x2xf32>,
    return
  }
  func.func @transform_0(%arg0: i32) -> (i32, i32, i32) {
    %c0_i32 = arith.constant 0 : i32
    %c0_i32_0 = arith.constant 0 : i32
    %c0_i32_1 = arith.constant 0 : i32
    return %arg0, %c0_i32, %c0_i32_0 : i32, i32, i32
  }
  func.func @transform_1(%arg0: i32) -> (i32, i32) {
    %c0_i32 = arith.constant 0 : i32
    %c0_i32_0 = arith.constant 0 : i32
    %c0_i32_1 = arith.constant 0 : i32
    return %c0_i32, %c0_i32_0 : i32, i32
  }
  func.func @transform_2(%arg0: i32) -> (i32, i32) {
    %c0_i32 = arith.constant 0 : i32
    %c0_i32_0 = arith.constant 0 : i32
    %c0_i32_1 = arith.constant 0 : i32
    return %c0_i32, %c0_i32_0 : i32, i32
  }
  func.func @transform_3(%arg0: i32) -> (i32, i32, i32) {
    %c0_i32 = arith.constant 0 : i32
    %c0_i32_0 = arith.constant 0 : i32
    %c0_i32_1 = arith.constant 0 : i32
    return %arg0, %c0_i32, %c0_i32_0 : i32, i32, i32
  }
  func.func @transform_4(%arg0: i32) -> (i32, i32, i32) {
    %c0_i32 = arith.constant 0 : i32
    %c0_i32_0 = arith.constant 0 : i32
    %c0_i32_1 = arith.constant 0 : i32
    return %arg0, %c0_i32, %c0_i32_0 : i32, i32, i32
  }
}

module attributes {stable_mosaic.version = 11 : i64} {
  func.func @_stage3_kernel(%arg0: i32, %arg1: memref<1x8x28xf32, #tpu.memory_space<vmem>>, %arg2: memref<1x8x32xf32, #tpu.memory_space<vmem>>, %arg3: memref<8x1xf32, #tpu.memory_space<vmem>>, %arg4: memref<8x1xf32, #tpu.memory_space<vmem>>, %arg5: memref<8x8xf32, #tpu.memory_space<vmem>>, %arg6: memref<8x1xf32, #tpu.memory_space<vmem>>, %arg7: memref<8x1xf32, #tpu.memory_space<vmem>>, %arg8: memref<8x1xf32, #tpu.memory_space<vmem>>, %arg9: memref<1x8x28xf32, #tpu.memory_space<vmem>>) attributes {dimension_semantics = [#tpu.dimension_semantics<parallel>], iteration_bounds = array<i64: 2>, scalar_prefetch = 0 : i64, scratch_operands = 0 : i64, tpu.core_type = #tpu.core_type<tc>, window_params = [{transform_indices = @transform_0, window_bounds = array<i64: 1, 8, 28>}, {transform_indices = @transform_1, window_bounds = array<i64: 1, 8, 32>}, {pipeline_mode = #tpu.pipeline_mode<synchronous>, transform_indices = @transform_2, window_bounds = array<i64: 8, 1>}, {pipeline_mode = #tpu.pipeline_mode<synchronous>, transform_indices = @transform_3, window_bounds = array<i64: 8, 1>}, {pipeline_mode = #tpu.pipeline_mode<synchronous>, transform_indices = @transform_4, window_bounds = array<i64: 8, 8>}, {pipeline_mode = #tpu.pipeline_mode<synchronous>, transform_indices = @transform_5, window_bounds = array<i64: 8, 1>}, {pipeline_mode = #tpu.pipeline_mode<synchronous>, transform_indices = @transform_6, window_bounds = array<i64: 8, 1>}, {pipeline_mode = #tpu.pipeline_mode<synchronous>, transform_indices = @transform_7, window_bounds = array<i64: 8, 1>}, {transform_indices = @transform_8, window_bounds = array<i64: 1, 8, 28>}]} {
    %c0 = arith.constant 0 : index
    %c0_0 = arith.constant 0 : index
    %c0_1 = arith.constant 0 : index
    %0 = vector.load %arg1[%c0, %c0_0, %c0_1] : memref<1x8x28xf32, #tpu.memory_space<vmem>>, vector<1x8x28xf32>
    %1 = vector.shape_cast %0 : vector<1x8x28xf32> to vector<8x28xf32>
    %c0_2 = arith.constant 0 : index
    %c0_3 = arith.constant 0 : index
    %2 = vector.load %arg3[%c0_2, %c0_3] : memref<8x1xf32, #tpu.memory_space<vmem>>, vector<8x1xf32>
    %c0_4 = arith.constant 0 : index
    %c0_5 = arith.constant 0 : index
    %3 = vector.load %arg4[%c0_4, %c0_5] : memref<8x1xf32, #tpu.memory_space<vmem>>, vector<8x1xf32>
    %c0_6 = arith.constant 0 : index
    %c0_7 = arith.constant 0 : index
    %4 = vector.load %arg5[%c0_6, %c0_7] : memref<8x8xf32, #tpu.memory_space<vmem>>, vector<8x8xf32>
    %c0_8 = arith.constant 0 : index
    %c0_9 = arith.constant 0 : index
    %5 = vector.load %arg6[%c0_8, %c0_9] : memref<8x1xf32, #tpu.memory_space<vmem>>, vector<8x1xf32>
    %6 = vector.broadcast %2 : vector<8x1xf32> to vector<8x28xf32>
    %7 = arith.mulf %1, %6 : vector<8x28xf32>
    %8 = vector.broadcast %3 : vector<8x1xf32> to vector<8x28xf32>
    %9 = arith.addf %7, %8 : vector<8x28xf32>
    %cst = arith.constant 0.000000e+00 : f32
    %10 = vector.broadcast %cst : f32 to vector<8x28xf32>
    %11 = arith.maximumf %9, %10 : vector<8x28xf32>
    %cst_10 = arith.constant dense<0.000000e+00> : vector<8x28xf32>
    %12 = tpu.matmul %4, %11, %cst_10 {dimension_numbers = #tpu.dot_dimension_numbers<[1], [0], [0], [1], [0, 0, 1, 1], [], []>} : vector<8x8xf32>, vector<8x28xf32>, vector<8x28xf32> -> vector<8x28xf32>
    %13 = vector.broadcast %5 : vector<8x1xf32> to vector<8x28xf32>
    %14 = arith.addf %12, %13 : vector<8x28xf32>
    %c0_11 = arith.constant 0 : index
    %c0_12 = arith.constant 0 : index
    %c2 = arith.constant 2 : index
    %15 = vector.load %arg2[%c0_11, %c0_12, %c2] : memref<1x8x32xf32, #tpu.memory_space<vmem>>, vector<1x8x28xf32>
    %16 = vector.shape_cast %15 : vector<1x8x28xf32> to vector<8x28xf32>
    %c0_13 = arith.constant 0 : index
    %c0_14 = arith.constant 0 : index
    %17 = vector.load %arg7[%c0_13, %c0_14] : memref<8x1xf32, #tpu.memory_space<vmem>>, vector<8x1xf32>
    %18 = vector.broadcast %17 : vector<8x1xf32> to vector<8x28xf32>
    %19 = arith.mulf %14, %18 : vector<8x28xf32>
    %c0_15 = arith.constant 0 : index
    %c0_16 = arith.constant 0 : index
    %20 = vector.load %arg8[%c0_15, %c0_16] : memref<8x1xf32, #tpu.memory_space<vmem>>, vector<8x1xf32>
    %21 = vector.broadcast %20 : vector<8x1xf32> to vector<8x28xf32>
    %22 = arith.addf %19, %21 : vector<8x28xf32>
    %23 = arith.addf %22, %16 : vector<8x28xf32>
    %cst_17 = arith.constant 0.000000e+00 : f32
    %24 = vector.broadcast %cst_17 : f32 to vector<8x28xf32>
    %25 = arith.maximumf %23, %24 : vector<8x28xf32>
    %c0_18 = arith.constant 0 : index
    %c0_19 = arith.constant 0 : index
    %c0_20 = arith.constant 0 : index
    %26 = vector.load %arg9[%c0_18, %c0_19, %c0_20] : memref<1x8x28xf32, #tpu.memory_space<vmem>>, vector<1x8x28xf32>
    %27 = vector.shape_cast %26 : vector<1x8x28xf32> to vector<8x28xf32>
    %28 = vector.shape_cast %25 : vector<8x28xf32> to vector<1x8x28xf32>
    tpu.vector_store %arg9[%c0_18, %c0_19, %c0_20], %28 {strides = array<i32>} : memref<1x8x28xf32, #tpu.memory_space<vmem>>, vector<1x8x28xf32>,
    return
  }
  func.func @transform_0(%arg0: i32) -> (i32, i32, i32) {
    %c0_i32 = arith.constant 0 : i32
    %c0_i32_0 = arith.constant 0 : i32
    %c0_i32_1 = arith.constant 0 : i32
    return %arg0, %c0_i32, %c0_i32_0 : i32, i32, i32
  }
  func.func @transform_1(%arg0: i32) -> (i32, i32, i32) {
    %c0_i32 = arith.constant 0 : i32
    %c0_i32_0 = arith.constant 0 : i32
    %c0_i32_1 = arith.constant 0 : i32
    return %arg0, %c0_i32, %c0_i32_0 : i32, i32, i32
  }
  func.func @transform_2(%arg0: i32) -> (i32, i32) {
    %c0_i32 = arith.constant 0 : i32
    %c0_i32_0 = arith.constant 0 : i32
    %c0_i32_1 = arith.constant 0 : i32
    return %c0_i32, %c0_i32_0 : i32, i32
  }
  func.func @transform_3(%arg0: i32) -> (i32, i32) {
    %c0_i32 = arith.constant 0 : i32
    %c0_i32_0 = arith.constant 0 : i32
    %c0_i32_1 = arith.constant 0 : i32
    return %c0_i32, %c0_i32_0 : i32, i32
  }
  func.func @transform_4(%arg0: i32) -> (i32, i32) {
    %c0_i32 = arith.constant 0 : i32
    %c0_i32_0 = arith.constant 0 : i32
    %c0_i32_1 = arith.constant 0 : i32
    return %c0_i32, %c0_i32_0 : i32, i32
  }
  func.func @transform_5(%arg0: i32) -> (i32, i32) {
    %c0_i32 = arith.constant 0 : i32
    %c0_i32_0 = arith.constant 0 : i32
    %c0_i32_1 = arith.constant 0 : i32
    return %c0_i32, %c0_i32_0 : i32, i32
  }
  func.func @transform_6(%arg0: i32) -> (i32, i32) {
    %c0_i32 = arith.constant 0 : i32
    %c0_i32_0 = arith.constant 0 : i32
    %c0_i32_1 = arith.constant 0 : i32
    return %c0_i32, %c0_i32_0 : i32, i32
  }
  func.func @transform_7(%arg0: i32) -> (i32, i32) {
    %c0_i32 = arith.constant 0 : i32
    %c0_i32_0 = arith.constant 0 : i32
    %c0_i32_1 = arith.constant 0 : i32
    return %c0_i32, %c0_i32_0 : i32, i32
  }
  func.func @transform_8(%arg0: i32) -> (i32, i32, i32) {
    %c0_i32 = arith.constant 0 : i32
    %c0_i32_0 = arith.constant 0 : i32
    %c0_i32_1 = arith.constant 0 : i32
    return %arg0, %c0_i32, %c0_i32_0 : i32, i32, i32
  }
}

module attributes {stable_mosaic.version = 11 : i64} {
  func.func @_stage2_kernel(%arg0: i32, %arg1: i32, %arg2: memref<1x8x28xf32, #tpu.memory_space<vmem>>, %arg3: memref<8x1xf32, #tpu.memory_space<vmem>>, %arg4: memref<8x1xf32, #tpu.memory_space<vmem>>, %arg5: memref<8x8xf32, #tpu.memory_space<vmem>>, %arg6: memref<8x1xf32, #tpu.memory_space<vmem>>, %arg7: memref<1x1x8x2xf32, #tpu.memory_space<vmem>>) attributes {dimension_semantics = [#tpu.dimension_semantics<parallel>, #tpu.dimension_semantics<parallel>], iteration_bounds = array<i64: 2, 1>, scalar_prefetch = 0 : i64, scratch_operands = 0 : i64, tpu.core_type = #tpu.core_type<tc>, window_params = [{transform_indices = @transform_0, window_bounds = array<i64: 1, 8, 28>}, {pipeline_mode = #tpu.pipeline_mode<synchronous>, transform_indices = @transform_1, window_bounds = array<i64: 8, 1>}, {pipeline_mode = #tpu.pipeline_mode<synchronous>, transform_indices = @transform_2, window_bounds = array<i64: 8, 1>}, {pipeline_mode = #tpu.pipeline_mode<synchronous>, transform_indices = @transform_3, window_bounds = array<i64: 8, 8>}, {pipeline_mode = #tpu.pipeline_mode<synchronous>, transform_indices = @transform_4, window_bounds = array<i64: 8, 1>}, {transform_indices = @transform_5, window_bounds = array<i64: 1, 1, 8, 2>}]} {
    %c0 = arith.constant 0 : index
    %c0_0 = arith.constant 0 : index
    %c0_1 = arith.constant 0 : index
    %0 = vector.load %arg2[%c0, %c0_0, %c0_1] : memref<1x8x28xf32, #tpu.memory_space<vmem>>, vector<1x8x28xf32>
    %1 = vector.shape_cast %0 : vector<1x8x28xf32> to vector<8x28xf32>
    %c0_2 = arith.constant 0 : index
    %c0_3 = arith.constant 0 : index
    %2 = vector.load %arg3[%c0_2, %c0_3] : memref<8x1xf32, #tpu.memory_space<vmem>>, vector<8x1xf32>
    %c0_4 = arith.constant 0 : index
    %c0_5 = arith.constant 0 : index
    %3 = vector.load %arg4[%c0_4, %c0_5] : memref<8x1xf32, #tpu.memory_space<vmem>>, vector<8x1xf32>
    %c0_6 = arith.constant 0 : index
    %c0_7 = arith.constant 0 : index
    %4 = vector.load %arg5[%c0_6, %c0_7] : memref<8x8xf32, #tpu.memory_space<vmem>>, vector<8x8xf32>
    %c0_8 = arith.constant 0 : index
    %c0_9 = arith.constant 0 : index
    %5 = vector.load %arg6[%c0_8, %c0_9] : memref<8x1xf32, #tpu.memory_space<vmem>>, vector<8x1xf32>
    %6 = vector.broadcast %2 : vector<8x1xf32> to vector<8x28xf32>
    %7 = arith.mulf %1, %6 : vector<8x28xf32>
    %8 = vector.broadcast %3 : vector<8x1xf32> to vector<8x28xf32>
    %9 = arith.addf %7, %8 : vector<8x28xf32>
    %cst = arith.constant 0.000000e+00 : f32
    %10 = vector.broadcast %cst : f32 to vector<8x28xf32>
    %11 = arith.maximumf %9, %10 : vector<8x28xf32>
    %cst_10 = arith.constant dense<0.000000e+00> : vector<8x28xf32>
    %12 = tpu.matmul %4, %11, %cst_10 {dimension_numbers = #tpu.dot_dimension_numbers<[1], [0], [0], [1], [0, 0, 1, 1], [], []>} : vector<8x8xf32>, vector<8x28xf32>, vector<8x28xf32> -> vector<8x28xf32>
    %13 = vector.broadcast %5 : vector<8x1xf32> to vector<8x28xf32>
    %14 = arith.addf %12, %13 : vector<8x28xf32>
    %cst_11 = arith.constant dense<0.000000e+00> : vector<8xf32>
    %15 = vector.multi_reduction <add>, %14, %cst_11 [1] : vector<8x28xf32> to vector<8xf32>
    %16 = vector.shape_cast %15 : vector<8xf32> to vector<8x1xf32>
    %17 = arith.mulf %14, %14 : vector<8x28xf32>
    %cst_12 = arith.constant dense<0.000000e+00> : vector<8xf32>
    %18 = vector.multi_reduction <add>, %17, %cst_12 [1] : vector<8x28xf32> to vector<8xf32>
    %19 = vector.shape_cast %18 : vector<8xf32> to vector<8x1xf32>
    %20 = tpu.concatenate %16, %19 in 1 : vector<8x1xf32>, vector<8x1xf32> -> vector<8x2xf32>
    %c0_13 = arith.constant 0 : index
    %c0_14 = arith.constant 0 : index
    %c0_15 = arith.constant 0 : index
    %c0_16 = arith.constant 0 : index
    %21 = vector.load %arg7[%c0_13, %c0_14, %c0_15, %c0_16] : memref<1x1x8x2xf32, #tpu.memory_space<vmem>>, vector<1x1x8x2xf32>
    %22 = vector.shape_cast %21 : vector<1x1x8x2xf32> to vector<8x2xf32>
    %23 = vector.shape_cast %20 : vector<8x2xf32> to vector<1x1x8x2xf32>
    tpu.vector_store %arg7[%c0_13, %c0_14, %c0_15, %c0_16], %23 {strides = array<i32>} : memref<1x1x8x2xf32, #tpu.memory_space<vmem>>, vector<1x1x8x2xf32>,
    return
  }
  func.func @transform_0(%arg0: i32, %arg1: i32) -> (i32, i32, i32) {
    %c0_i32 = arith.constant 0 : i32
    %c0_i32_0 = arith.constant 0 : i32
    return %arg0, %c0_i32, %arg1 : i32, i32, i32
  }
  func.func @transform_1(%arg0: i32, %arg1: i32) -> (i32, i32) {
    %c0_i32 = arith.constant 0 : i32
    %c0_i32_0 = arith.constant 0 : i32
    %c0_i32_1 = arith.constant 0 : i32
    return %c0_i32, %c0_i32_0 : i32, i32
  }
  func.func @transform_2(%arg0: i32, %arg1: i32) -> (i32, i32) {
    %c0_i32 = arith.constant 0 : i32
    %c0_i32_0 = arith.constant 0 : i32
    %c0_i32_1 = arith.constant 0 : i32
    return %c0_i32, %c0_i32_0 : i32, i32
  }
  func.func @transform_3(%arg0: i32, %arg1: i32) -> (i32, i32) {
    %c0_i32 = arith.constant 0 : i32
    %c0_i32_0 = arith.constant 0 : i32
    %c0_i32_1 = arith.constant 0 : i32
    return %c0_i32, %c0_i32_0 : i32, i32
  }
  func.func @transform_4(%arg0: i32, %arg1: i32) -> (i32, i32) {
    %c0_i32 = arith.constant 0 : i32
    %c0_i32_0 = arith.constant 0 : i32
    %c0_i32_1 = arith.constant 0 : i32
    return %c0_i32, %c0_i32_0 : i32, i32
  }
  func.func @transform_5(%arg0: i32, %arg1: i32) -> (i32, i32, i32, i32) {
    %c0_i32 = arith.constant 0 : i32
    %c0_i32_0 = arith.constant 0 : i32
    %c0_i32_1 = arith.constant 0 : i32
    return %arg0, %arg1, %c0_i32, %c0_i32_0 : i32, i32, i32, i32
  }
}

</mosaic_0001>

<bundles_post_ra>
// kernel: residual_block.4
= control target key start
LH: loop header
LB: loop body
LE: loop exit
PB: predicated region body
PF: predicated region fallthrough
CT: control target
= control target key end

     0   :  { %s537_s18 = smov 0   ;;  %s539_s19 = smov 0   ;;  %s582_s0 = inlined_call_operand.vmem [shape: f32[2,8,28], index: 0, kind: input, shape index: {}]   ;;  %s583_s1 = inlined_call_operand.vmem [shape: f32[8,1], index: 1, kind: input, shape index: {}]   ;;  %s584_s2 = inlined_call_operand.vmem [shape: f32[8,1], index: 2, kind: input, shape index: {}]   ;;  %s585_s3 = inlined_call_operand.vmem [shape: f32[8,8], index: 3, kind: input, shape index: {}]   ;;  %s586_s4 = inlined_call_operand.vmem [shape: f32[8,1], index: 4, kind: input, shape index: {}]   ;;  %s587_s5 = inlined_call_operand.vmem [shape: f32[2,1,8,2], index: 5, kind: output, shape index: {}]  }
   0x1   :  { %s541_s20 = smov 0  }
   0x2 LB: > { %s27_s21 = sadd.s32 1, %s498_s19  ;;  %p438_p0 = scmp.ge.s32.totalorder %s502_s20, 1  ;;  %s502_s20 = sphi %s541_s20, %s15_s20   ;;  %s498_s19 = sphi %s539_s19, %s589_s19   ;;  %s494_s18 = sphi %s537_s18, %s588_s18  }
   0x3   : > { %p29_p1 = scmp.ge.s32.totalorder %s27_s21, 2  ;;  %p205_p2 = scmp.lt.s32.totalorder %s502_s20, 3 }
   0x5   : > { %s591_s21 = smov (%p29_p1, %s27_s21), 0  ;;  %p206_p3 = pnand %p438_p0, %p205_p2 }
   0x6   : > { %v252_v0 = vld [vmem:[%s583_s1] sm:$0xff] (!%p206_p3)  ;;  %v504_v1 = vmov (!%p206_p3), 0   ;;  %v505_v3 = vmov (!%p206_p3), 0.0   ;;  %vm506_vm0 = vmmov (!%p206_p3), 0   ;;  %p237_p4 = scmp.lt.s32.totalorder (!%p206_p3), %s494_s18, 1  ;;  %vm274_vm1 = vcmask (!%p206_p3), 64512  }
   0x7   : > { %209 = sbr.rel (%p206_p3) target bundleno = 506 (0x1fa), region = 40  ;;  %478 = vset.pattern.permute.xlu0 (!%p206_p3), %v504_v1  ;;  %479 = vset.pattern.permute.xlu1 (!%p206_p3), %v504_v1  ;;  %v253_v2 = vld [vmem:[%s584_s2] sm:$0xff] (!%p206_p3)  ;;  %vm348_vm2 = vcmask (!%p206_p3), 228352   ;;  %vm356_vm3 = vcmask (!%p206_p3), 7168   ;;  %vm358_vm4 = vcmask (!%p206_p3), 15360  }
   0x8   : > { %258 = vperm.xlu0 (!%p206_p3), %478, %v252_v0   ;;  %446 = vmatprep.subr.mxu0 (!%p206_p3), %v505_v3  ;;  %v255_v4 = vld [vmem:[%s586_s4] sm:$0xff] (!%p206_p3) }
   0x9   : > { %448 = vmatprep.mubr.msk.f32.mxu0 (!%p206_p3), %vm506_vm0, %v505_v3  ;;  %271 = vperm.xlu1 (!%p206_p3), %479, %v255_v4   ;;  %v254_v11 = vld [vmem:[%s585_s3] sm:$0xff] (!%p206_p3) }
   0xc   : > { %264 = vperm.xlu0 (!%p206_p3), %478, %v253_v2  }
   0xe   : > { %s593_s18 = smov (!%p237_p4, %s494_s18), 1 }
   0xf   : > { %s439_s28 = sshll.u32 %s593_s18, 3 }
  0x10   : > { %s243_s6 = scalar_lea.vmem %s582_s0, %s439_s28  ;;  %s250_s11 = scalar_lea.vmem %s587_s5, %s439_s28 }
  0x11   : > { %v251_v6 = vld [vmem:[%s243_s6] sm:$0xff] }
  0x87   : > { %v259_v5 = vpop.permute.xlu0 %258 }
  0x88   : > { %v261_v7 = vmul.f32 %v259_v5, %v251_v6  ;;  %v272_v12 = vpop.permute.xlu1 %271 }
  0x8b   : > { %v265_v8 = vpop.permute.xlu0 %264 }
  0x8c   : > { %v267_v9 = vadd.f32 %v265_v8, %v261_v7 }
  0x8e   : > { %v268_v10 = vmax.f32 %v267_v9, 0.0 }
  0x90   : > { %447 = vmatpush3.msra.mxu0 %v268_v10 }
  0x91   : > { %449 = vmatmul.mubr.msk.f32.vlgmr.msra.gmra.mrb[0].mxu0 %vm274_vm1, %v254_v11 }
 0x164   : > { %v344_v13 = vpop.f32.mrb[0].mxu0 }
 0x165   : > { %v345_v14 = vadd.f32 %v344_v13, %v272_v12  ;;  %v450_v15 = vpop.f32.mrb[1].mxu0 }
 0x167   : > { %v349_v16 = vsel %vm348_vm2, %v345_v14, 0.0  ;;  %v352_v17 = vmul.f32 %v345_v14, %v345_v14 }
 0x168   : > { %350 = vadd.xlane.f32.xlu1 %v349_v16 }
 0x169   : > { %v353_v18 = vsel %vm348_vm2, %v352_v17, 0.0 }
 0x16a   : > { %354 = vadd.xlane.f32.xlu0 %v353_v18 }
 0x1f5   : > { %v351_v19 = vpop.xlane.xlu1 %350 }
 0x1f7   : > { %v355_v20 = vpop.xlane.xlu0 %354 }
 0x1f8   : > { %v357_v21 = vsel %vm356_vm3, %v351_v19, %v355_v20 }
 0x1f9   : > { %359 = vst.msk [vmem:[%s250_s11] sm:$0xff] %vm358_vm4, %v357_v21 }
 0x1fa PF: > { %s15_s20 = sadd.s32 1, %s502_s20   ;;  %s588_s18 = smov %s498_s19 }
 0x1fb   : > { %p12_p5 = scmp.ge.s32.totalorder %s15_s20, 4   ;;  %s589_s19 = smov %s591_s21 }
 0x1fd   :  { %14 = sbr.rel (!%p12_p5) target bundleno = 2 (0x2), region = 70 }

// kernel: residual_block.5
= control target key start
LH: loop header
LB: loop body
LE: loop exit
PB: predicated region body
PF: predicated region fallthrough
CT: control target
= control target key end

     0   :  { %13 = vsyncpa [#allocation3], 0  ;;  %s822_s0 = inlined_call_operand.vmem [shape: f32[2,8,28], index: 0, kind: input, shape index: {}]   ;;  %s823_s1 = inlined_call_operand.vmem [shape: f32[2,8,32], index: 1, kind: input, shape index: {}]   ;;  %s824_s2 = inlined_call_operand.vmem [shape: f32[8,1], index: 2, kind: input, shape index: {}]   ;;  %s825_s3 = inlined_call_operand.vmem [shape: f32[8,1], index: 3, kind: input, shape index: {}]   ;;  %s826_s4 = inlined_call_operand.vmem [shape: f32[8,8], index: 4, kind: input, shape index: {}]   ;;  %s827_s5 = inlined_call_operand.vmem [shape: f32[8,1], index: 5, kind: input, shape index: {}]   ;;  %s828_s6 = inlined_call_operand.vmem [shape: f32[8,1], index: 6, kind: input, shape index: {}]   ;;  %s829_s7 = inlined_call_operand.vmem [shape: f32[8,1], index: 7, kind: input, shape index: {}]   ;;  %s830_s8 = inlined_call_operand.hbm [shape: f32[2,8,28], index: 8, kind: output, shape index: {}]  }
   0x1   :  { %15 = vsyncpa [#allocation3 + $0x1], 0  ;;  %s701_s27 = smov 0   ;;  %s703_s28 = smov 0  }
   0x2   :  { %s705_s29 = smov 0   ;;  %s707_s30 = smov 0  }
   0x3 LB: > { %s722_s9 = sadd.s32 4294967295, %s649_s30   ;;  %s523_s10 = sadd.s32 4294967294, %s649_s30   ;;  %s649_s30 = sphi %s707_s30, %s836_s30   ;;  %s645_s29 = sphi %s705_s29, %s835_s29   ;;  %s641_s28 = sphi %s703_s28, %s834_s28   ;;  %s637_s27 = sphi %s701_s27, %s833_s27  }
   0x4   : > { %s726_s11 = sadd.s32 1, %s649_s30   ;;  %s206_s12 = sadd.s32 1, %s645_s29 }
   0x5   : > { %s203_s13 = ssub.s32 %s649_s30, %s726_s11  ;;  %p216_p0 = scmp.ne.s32.totalorder %s645_s29, %s641_s28 }
   0x6   : > { %p204_p1 = scmp.eq.s32.totalorder %s203_s13, 0  ;;  %p217_p2 = scmp.eq.s32.totalorder %s722_s9, 1 }
   0x7   : > { %p222_p3 = scmp.ne.s32.totalorder %s641_s28, %s637_s27  ;;  %p223_p4 = scmp.eq.s32.totalorder %s523_s10, 1 }
   0x8   : > { %s737_s14 = scalar_select %p204_p1, %s645_s29, %s206_s12  }
   0x9   : > { %p739_p5 = por %p217_p2, %p216_p0  ;;  %p743_p6 = por %p223_p4, %p222_p3 }
   0xa   : > { %p526_p7 = scmp.ge.s32.totalorder %s649_s30, 1  ;;  %p273_p8 = scmp.lt.s32.totalorder %s649_s30, 3 }
   0xc   : > { %p274_p9 = pnand %p526_p7, %p273_p8 }
   0xd   : > { %v319_v0 = vld [vmem:[%s824_s2] sm:$0xff] (!%p274_p9)  ;;  %v651_v1 = vmov (!%p274_p9), 0   ;;  %p310_p10 = scmp.lt.s32.totalorder (!%p274_p9), %s722_s9, 1  ;;  %v652_v4 = vmov (!%p274_p9), 0.0   ;;  %vm653_vm0 = vmmov (!%p274_p9), 0   ;;  %s654_s19 = smov (!%p274_p9), 126  }
   0xe   : > { %277 = sbr.rel (%p274_p9) target bundleno = 388 (0x184), region = 52  ;;  %585 = vset.pattern.permute.xlu0 (!%p274_p9), %v651_v1  ;;  %586 = vset.pattern.permute.xlu1 (!%p274_p9), %v651_v1  ;;  %v320_v2 = vld [vmem:[%s825_s3] sm:$0xff] (!%p274_p9)  ;;  %vm341_vm1 = vcmask (!%p274_p9), 64512   ;;  %s307_s25 = sand.u32 (!%p274_p9), 1, %s641_s28   ;;  %vm436_vm2 = vcmask (!%p274_p9), 228352  }
   0xf   : > { %325 = vperm.xlu0 (!%p274_p9), %585, %v319_v0   ;;  %v423_v3 = vld [vmem:[%s829_s7] sm:$0xff] (!%p274_p9)  ;;  %537 = vmatprep.subr.mxu0 (!%p274_p9), %v652_v4  ;;  %s527_s10 = sshll.u32 (!%p274_p9), %s307_s25, 3  ;;  %s439_s20 = scalar_lea.sflag (!%p274_p9), [#allocation3], %s307_s25 }
  0x10   : > { %539 = vmatprep.mubr.msk.f32.mxu0 (!%p274_p9), %vm653_vm0, %v652_v4  ;;  %v322_v5 = vld [vmem:[%s827_s5] sm:$0xff] (!%p274_p9)  ;;  %s309_s12 = scalar_lea.vmem (!%p274_p9), [#allocation2], %s527_s10 }
  0x11   : > { %338 = vperm.xlu1 (!%p274_p9), %586, %v322_v5   ;;  %v416_v6 = vld [vmem:[%s828_s6] sm:$0xff] (!%p274_p9)  ;;  %s452_s13 = sshll.u32 (!%p274_p9), %s309_s12, 4  ;;  %s782_s13 = int_to_ptr.vmem [resolvable:$true] %s452_s13 }
  0x12   : > { %v321_v14 = vld [vmem:[%s826_s4] sm:$0xff] (!%p274_p9)  ;;  %s587_s21 = scalar_lea.vmem (!%p274_p9), %s782_s13, 128 }
  0x13   : > { %331 = vperm.xlu0 (!%p274_p9), %585, %v320_v2   ;;  %p588_p11 = scmp.ne.s32.totalorder (!%p274_p9), %s782_s13, %s587_s21 }
  0x15   : > { %s311_s23 = scalar_select %p310_p10, %s722_s9, 1  ;;  %419 = vperm.xlu1 %586, %v416_v6  }
  0x16   : > { %p589_p12 = pnand %p588_p11, %p739_p5 }
  0x17   : > { %426 = vperm.xlu0 %585, %v423_v3   ;;  %s528_s26 = sshll.u32 %s311_s23, 3 }
  0x18   : > { %s317_s18 = scalar_lea.vmem %s823_s1, %s528_s26  ;;  %s313_s22 = scalar_lea.vmem %s822_s0, %s528_s26 }
  0x19   : > { %v415_v7 = vld [vmem:[%s317_s18] sm:$0xff]  ;;  %s532_s26 = sshll.u32 %s722_s9, 7  ;;  %p590_p13 = pneg %p589_p12 }
  0x1a   : > { %431 = vrot.lane.b32.xlu1 %v415_v7, %s654_s19  ;;  %v318_v9 = vld [vmem:[%s313_s22] sm:$0xff]  ;;  %s780_s19 = scalar_lea.hbm %s830_s8, %s532_s26  ;;  %s655_s9 = smov [#allocation2]  }
  0x1b   : > { %s591_s22 = sshll.u32 %s655_s9, 4  ;;  %s592_s22 = int_to_ptr.vmem [resolvable:$false] %s591_s22 }
  0x1c   : > { %s593_s23 = scalar_lea.vmem %s592_s22, 256  ;;  %p594_p0 = scmp.lt.s32.totalorder %s782_s13, %s592_s22 }
  0x1d   : > { %p595_p1 = scmp.lt.s32.totalorder %s593_s23, %s587_s21 }
  0x1f   : > { %p596_p2 = por %p595_p1, %p594_p0 }
  0x21   : > { %p597_p3 = pnand %p596_p2, %p590_p13 }
  0x8e   : > { %v326_v8 = vpop.permute.xlu0 %325 }
  0x8f   : > { %v328_v10 = vmul.f32 %v326_v8, %v318_v9 }
  0x90   : > { %v339_v15 = vpop.permute.xlu1 %338 }
  0x92   : > { %v332_v11 = vpop.permute.xlu0 %331 }
  0x93   : > { %v334_v12 = vadd.f32 %v332_v11, %v328_v10 }
  0x94   : > { %v420_v16 = vpop.permute.xlu1 %419 }
  0x95   : > { %v335_v13 = vmax.f32 %v334_v12, 0.0 }
  0x96   : > { %v427_v21 = vpop.permute.xlu0 %426 }
  0x97   : > { %538 = vmatpush3.msra.mxu0 %v335_v13 }
  0x98   : > { %540 = vmatmul.mubr.msk.f32.vlgmr.msra.gmra.mrb[0].mxu0 %vm341_vm1, %v321_v14  ;;  %v432_v22 = vpop.permute.xlu1 %431 }
 0x16b   : > { %v411_v17 = vpop.f32.mrb[0].mxu0 }
 0x16c   : > { %v412_v18 = vadd.f32 %v411_v17, %v339_v15  ;;  %v541_v19 = vpop.f32.mrb[1].mxu0 }
 0x16e   : > { %v422_v20 = vmul.f32 %v420_v16, %v412_v18 }
 0x170   : > { %v429_v23 = vadd.f32 %v427_v21, %v422_v20 }
 0x172   : > { %v434_v24 = vadd.f32 %v432_v22, %v429_v23 }
 0x174   : > { %v435_v25 = vmax.f32 %v434_v24, 0.0 }
 0x176   : > { %437 = vst.msk [vmem:[%s309_s12] sm:$0xff] %vm436_vm2, %v435_v25 }
 0x177   : > { %600 = shalt.err (!%p597_p3)
}
 0x178   : > { %s601_s24 = scalar_lea.hbm %s780_s19, 128  ;;  %s605_s26 = scalar_lea.hbm %s830_s8, 256 }
 0x179   : > { %p602_p4 = scmp.ne.s32.totalorder %s780_s19, %s601_s24  ;;  %p606_p9 = scmp.lt.u32.totalorder %s780_s19, %s830_s8 }
 0x17a   : > { %p607_p10 = scmp.lt.u32.totalorder %s605_s26, %s601_s24  ;;  %p609_p12 = scmp.lt.u32.totalorder %s601_s24, %s780_s19 }
 0x17b   : > { %p603_p7 = pnand %p602_p4, %p739_p5 }
 0x17c   : > { %p608_p11 = por %p607_p10, %p606_p9 }
 0x17d   : > { %p604_p8 = pneg %p603_p7 }
 0x17e   : > { %p610_p13 = por %p609_p12, %p608_p11 }
 0x180   : > { %p611_p0 = pnand %p610_p13, %p604_p8 }
 0x182   : > { %614 = shalt.err (!%p611_p0)
}
 0x183   : > { %542 = dma.vmem_to_hbm [thread:$0]  (%p739_p5), %s782_s13, 128, %s780_s19, %s439_s20  }
 0x184 PF: > { %p548_p1 = scmp.ge.s32.totalorder %s649_s30, 2  ;;  %s464_s18 = sand.u32 1, %s637_s27  }
 0x185   : > { %s465_s21 = scalar_lea.sflag [#allocation3], %s464_s18 }
 0x186   : > { %p545_p2 = pnand %p548_p1, %p743_p6 }
 0x188   : > { %632 = dma.done.wait (!%p545_p2), %s465_s21, 128  }
 0x189   : > { %634 = vsyncadd (!%p545_p2), %s465_s21, 4294967168  ;;  %p18_p3 = scmp.ge.s32.totalorder %s726_s11, 4   ;;  %s833_s27 = smov %s641_s28 }
 0x18a   : > { %s834_s28 = smov %s645_s29  ;;  %s835_s29 = smov %s737_s14 }
 0x18b   : > { %s836_s30 = smov %s726_s11  ;;  %20 = sbr.rel (!%p18_p3) target bundleno = 3 (0x3), region = 90 }
 0x192   :  { %470 = vsyncpa [#allocation3], 1 }
 0x193   :  { %472 = vsyncpa [#allocation3 + $0x1], 1 }

// kernel: residual_block.3
= control target key start
LH: loop header
LB: loop body
LE: loop exit
PB: predicated region body
PF: predicated region fallthrough
CT: control target
= control target key end

     0   :  { %s472_s15 = smov 0   ;;  %s503_s0 = inlined_call_operand.vmem [shape: f32[2,8,32], index: 0, kind: input, shape index: {}]   ;;  %s504_s1 = inlined_call_operand.vmem [shape: f32[8,24], index: 1, kind: input, shape index: {}]   ;;  %s505_s2 = inlined_call_operand.vmem [shape: f32[8,1], index: 2, kind: input, shape index: {}]   ;;  %s506_s3 = inlined_call_operand.vmem [shape: f32[2,8,28], index: 3, kind: output, shape index: {0}]   ;;  %s507_s4 = inlined_call_operand.vmem [shape: f32[2,8,2], index: 4, kind: output, shape index: {1}]  }
   0x1 LB: > { %s390_s16 = sadd.s32 4294967295, %s439_s15   ;;  %p394_p0 = scmp.ge.s32.totalorder %s439_s15, 1  ;;  %s439_s15 = sphi %s472_s15, %s15_s15  }
   0x2   : > { %p164_p1 = scmp.lt.s32.totalorder %s439_s15, 3 }
   0x4   : > { %p165_p2 = pnand %p394_p0, %p164_p1 }
   0x5   : > { %p192_p3 = scmp.lt.s32.totalorder (!%p165_p2), %s390_s16, 1  ;;  %v441_v0 = vmov (!%p165_p2), 0.0|0.0   ;;  %vm442_vm0 = vmmov (!%p165_p2), 0   ;;  %v443_v1 = vmov (!%p165_p2), 0.0   ;;  %v213_v2 = vld [vmem:[%s505_s2] sm:$0xff] (!%p165_p2)  ;;  %v444_v3 = vmov (!%p165_p2), 0  }
   0x6   : > { %168 = sbr.rel (%p165_p2) target bundleno = 500 (0x1f4), region = 32  ;;  %414 = vmatprep.subr.bf16.mxu0 (!%p165_p2), %v441_v0  ;;  %411 = vmatprep.mubr.msk.f32.mxu0 (!%p165_p2), %vm442_vm0, %v443_v1  ;;  %s445_s23 = smov (!%p165_p2), 126   ;;  %v212_v8 = vld [vmem:[%s504_s1] sm:$0xff] (!%p165_p2)  ;;  %vm219_vm1 = vcmask (!%p165_p2), 195584   ;;  %vm293_vm2 = vcmask (!%p165_p2), 228352   ;;  %vm302_vm3 = vcmask (!%p165_p2), 7168  }
   0x7   : > { %431 = vset.pattern.permute.xlu1 (!%p165_p2), %v444_v3  ;;  %432 = vset.pattern.permute.xlu0 (!%p165_p2), %v444_v3  ;;  %s446_s24 = smov (!%p165_p2), 124   ;;  %vm304_vm4 = vcmask (!%p165_p2), 15360  }
   0x8   : > { %216 = vperm.xlu1 (!%p165_p2), %431, %v213_v2  }
   0xd   : > { %s509_s16 = smov (!%p192_p3, %s390_s16), 1 }
   0xe   : > { %s483_s19 = sshll.u32 %s509_s16, 3 }
   0xf   : > { %s195_s22 = scalar_lea.vmem %s503_s0, %s483_s19  ;;  %s199_s29 = scalar_lea.vmem %s506_s3, %s483_s19 }
  0x10   : > { %v204_v4 = vld [vmem:[%s195_s22] sm:$0xff]  ;;  %s203_s6 = scalar_lea.vmem %s507_s4, %s483_s19 }
  0x11   : > { %206 = vrot.lane.b32.xlu0 %v204_v4, %s445_s23 }
  0x15   : > { %209 = vrot.lane.b32.xlu0 %v204_v4, %s446_s24 }
  0x83   : > { %v207_v5 = vpop.permute.xlu0 %206 }
  0x84   : > { %v415_v6 = vpack.c.bf16 %v207_v5, %v204_v4 }
  0x86   : > { %416 = vmatpush3.bf16.msra.mxu0 %v415_v6 }
  0x87   : > { %409 = vmatprep.subr.mxu0 %v443_v1  ;;  %v210_v7 = vpop.permute.xlu0 %209  ;;  %v217_v9 = vpop.permute.xlu1 %216 }
  0x8a   : > { %410 = vmatpush3.msra.mxu0 %v210_v7 }
  0x8b   : > { %412 = vmatmul.mubr.msk.f32.vlgmr.msra.gmra.mrb[0].mxu0 %vm219_vm1, %v212_v8 }
 0x15e   : > { %v289_v10 = vpop.f32.mrb[0].mxu0 }
 0x15f   : > { %v290_v11 = vadd.f32 %v289_v10, %v217_v9  ;;  %v413_v12 = vpop.f32.mrb[1].mxu0 }
 0x161   : > { %v295_v13 = vsel %vm293_vm2, %v290_v11, 0.0  ;;  %294 = vst.msk [vmem:[%s199_s29] sm:$0xff] %vm293_vm2, %v290_v11  ;;  %v298_v14 = vmul.f32 %v290_v11, %v290_v11 }
 0x162   : > { %296 = vadd.xlane.f32.xlu1 %v295_v13 }
 0x163   : > { %v299_v15 = vsel %vm293_vm2, %v298_v14, 0.0 }
 0x164   : > { %300 = vadd.xlane.f32.xlu0 %v299_v15 }
 0x1ef   : > { %v297_v16 = vpop.xlane.xlu1 %296 }
 0x1f1   : > { %v301_v17 = vpop.xlane.xlu0 %300 }
 0x1f2   : > { %v303_v18 = vsel %vm302_vm3, %v297_v16, %v301_v17 }
 0x1f3   : > { %305 = vst.msk [vmem:[%s203_s6] sm:$0xff] %vm304_vm4, %v303_v18 }
 0x1f4 PF: > { %s15_s15 = sadd.s32 1, %s439_s15  }
 0x1f5   : > { %p12_p4 = scmp.ge.s32.totalorder %s15_s15, 4  }
 0x1f7   :  { %14 = sbr.rel (!%p12_p4) target bundleno = 1 (0x1), region = 74 }

</bundles_post_ra>
